<compile_context>
chip_gen: v7x
topology: tpu7x:2x2x1
jax: 0.10.0
libtpu: 0.0.40
codegen_flags: <defaults>
</compile_context>

<pallas_src>
import functools

import jax
import jax.numpy as jnp
from jax.experimental import pallas as pl
from jax.experimental.pallas import tpu as pltpu


def _round_up(n, m):
    return ((n + m - 1) // m) * m


def _cdiv(a, b):
    return (a + b - 1) // b


def _mlp_ws_kernel(x_ref, w1_ref, b1_ref, w2_ref, b2_ref, w3_ref, b3_ref,
                   o_ref, *, h1):
    # x_ref : (tb, 2D) f32  -> cast to bf16 in-kernel (no wrapper HBM cast pass)
    # w1_ref: (2D, 2H1) bf16 block-diagonal [[w1,0],[0,w1]] -> shared first
    #         layer on both pair rows is a single MXU dot.
    # w2_ref: (H1, H2) bf16, pre-scaled by 0.5 (pair mean folded in).
    # w3_ref: (H2, C)  bf16. Biases f32. o_ref: (tb, C) f32.
    x = x_ref[...].astype(jnp.bfloat16)

    # Shared layer for both pair rows in one dot; bias add + ReLU in f32.
    h = jnp.dot(x, w1_ref[...], preferred_element_type=jnp.float32) + b1_ref[...]
    h = jnp.maximum(h, 0.0)                                   # (tb, 2*H1)

    # Pair mean: the 0.5 is folded into w2; the lane slice/add uses the idle XLU.
    m = (h[:, :h1] + h[:, h1:]).astype(jnp.bfloat16)          # (tb, H1)

    # Second layer + ReLU.
    h2 = jnp.maximum(
        jnp.dot(m, w2_ref[...], preferred_element_type=jnp.float32)
        + b2_ref[...], 0.0)                                   # (tb, H2) f32

    # Final linear to num_classes.
    o_ref[...] = (
        jnp.dot(h2.astype(jnp.bfloat16), w3_ref[...],
                preferred_element_type=jnp.float32)
        + b3_ref[...]
    ).astype(o_ref.dtype)                                     # (tb, C)


def mlp_weight_sharing_forward(x, params, *, block_b=4096):
    """x: (B, 2, D) or (B, 2*D) float32.
    params: PyTorch-Linear-style dict w1,b1,w2,b2,w3,b3 (w: (out,in), b: (1,out))."""
    if x.ndim == 3:
        B, _, D = x.shape
        x2 = x.reshape(B, 2 * D)          # contiguous trailing-dim collapse: free
    else:
        B, two_d = x.shape
        D = two_d // 2
        x2 = x
    H1 = params["w1"].shape[0]
    H2 = params["w2"].shape[0]
    C = params["w3"].shape[0]

    # --- one-time wrapper-side weight prep (tiny constants; no pass over x) ---
    w1t = params["w1"].T.astype(jnp.float32)                        # (D, H1)
    z = jnp.zeros((D, H1), jnp.float32)
    w1_blk = jnp.block([[w1t, z], [z, w1t]]).astype(jnp.bfloat16)   # (2D, 2H1)
    b1 = params["b1"].reshape(1, H1).astype(jnp.float32)
    b1_blk = jnp.concatenate([b1, b1], axis=-1)                     # (1, 2H1)
    w2t = (0.5 * params["w2"].T).astype(jnp.bfloat16)               # (H1, H2), mean folded
    b2 = params["b2"].reshape(1, H2).astype(jnp.float32)
    w3t = params["w3"].T.astype(jnp.bfloat16)                       # (H2, C)
    b3 = params["b3"].reshape(1, C).astype(jnp.float32)

    # --- batch tiling: large tiles, no jnp.pad (Pallas masks the tail block) ---
    tb = _round_up(max(8, min(block_b, B)), 8)
    nb = _cdiv(B, tb)
    if nb == 1 and B > 8:
        # Keep >= 2 grid steps so the "parallel" batch axis can shard across
        # both TensorCores on v7x (harmless on single-TC v5e/v6e).
        tb = _round_up(_cdiv(B, 2), 8)
        nb = _cdiv(B, tb)

    flops = 2 * nb * tb * ((2 * D) * (2 * H1) + H1 * H2 + H2 * C)
    bytes_accessed = (
        nb * tb * 2 * D * 4                  # x stream (f32, cast in-kernel)
        + (2 * D) * (2 * H1) * 2             # w1 block-diag (bf16)
        + (H1 * H2 + H2 * C) * 2             # w2, w3 (bf16)
        + (2 * H1 + H2 + C) * 4              # biases (f32)
        + nb * tb * C * 4                    # output (f32)
    )

    kernel = functools.partial(_mlp_ws_kernel, h1=H1)

    out = pl.pallas_call(
        kernel,
        out_shape=jax.ShapeDtypeStruct((B, C), jnp.float32),
        grid_spec=pltpu.PrefetchScalarGridSpec(
            num_scalar_prefetch=0,
            grid=(nb,),
            in_specs=[
                pl.BlockSpec((tb, 2 * D), lambda i: (i, 0)),       # x (streamed)
                pl.BlockSpec((2 * D, 2 * H1), lambda i: (0, 0)),   # w1 block-diag (resident)
                pl.BlockSpec((1, 2 * H1), lambda i: (0, 0)),       # b1 (duplicated)
                pl.BlockSpec((H1, H2), lambda i: (0, 0)),          # w2 (0.5 folded)
                pl.BlockSpec((1, H2), lambda i: (0, 0)),           # b2
                pl.BlockSpec((H2, C), lambda i: (0, 0)),           # w3
                pl.BlockSpec((1, C), lambda i: (0, 0)),            # b3
            ],
            out_specs=pl.BlockSpec((tb, C), lambda i: (i, 0)),
        ),
        compiler_params=pltpu.CompilerParams(
            dimension_semantics=("parallel",),        # megacore on v7x
            vmem_limit_bytes=32 * 1024 * 1024,        # safe on v5e/v6e/v7x
        ),
        cost_estimate=pl.CostEstimate(
            flops=flops, transcendentals=0, bytes_accessed=bytes_accessed),
    )(x2, w1_blk, b1_blk, w2t, b2, w3t, b3)

    return out


def make_params(ft_dims, hidden1, hidden2, num_classes, key):
    """Deterministic PyTorch-Linear-style init: U(-1/sqrt(in), 1/sqrt(in))."""
    ks = jax.random.split(key, 6)

    def lin(kw, kb, out_d, in_d):
        bound = 1.0 / jnp.sqrt(jnp.float32(in_d))
        w = jax.random.uniform(kw, (out_d, in_d), jnp.float32, -bound, bound)
        b = jax.random.uniform(kb, (1, out_d), jnp.float32, -bound, bound)
        return w, b

    w1, b1 = lin(ks[0], ks[1], hidden1, ft_dims)
    w2, b2 = lin(ks[2], ks[3], hidden2, hidden1)
    w3, b3 = lin(ks[4], ks[5], num_classes, hidden2)
    return dict(w1=w1, b1=b1, w2=w2, b2=b2, w3=w3, b3=b3)


def reference_forward(x, params):
    """Pure-JAX f32 reference mirroring the PyTorch forward exactly.
    Dropout(p=0) is identity; no SlicedSoftmax/Indexing in this config."""
    if x.ndim == 2:
        x = x.reshape(x.shape[0], 2, -1)
    h = jnp.maximum(jnp.einsum("bpd,hd->bph", x, params["w1"]) + params["b1"], 0.0)
    m = h.mean(axis=1)
    h2 = jnp.maximum(m @ params["w2"].T + params["b2"], 0.0)
    return h2 @ params["w3"].T + params["b3"]


if __name__ == "__main__":
    key = jax.random.PRNGKey(0)
    k_x, k_p = jax.random.split(key)

    # Small shapes consistent with the module config.
    B, ft_dims, H1, H2, num_classes = 42, 16, 32, 32, 8
    x = jax.random.normal(k_x, (B, 2, ft_dims), jnp.float32)
    params = make_params(ft_dims, H1, H2, num_classes, k_p)

    ref = reference_forward(x, params)

    # Small tile: 3 grid steps including a masked partial tail block (rows 32..41).
    out_small = jax.block_until_ready(
        mlp_weight_sharing_forward(x, params, block_b=16))
    # Default (large) tile: wrapper splits the batch into 2 tiles (v7x megacore path).
    out_big = jax.block_until_ready(mlp_weight_sharing_forward(x, params))

    assert out_small.shape == (B, num_classes)
    assert out_big.shape == (B, num_classes)
    # All three dots run on the bf16 MXU path (f32 accumulation) -> loosened tol
    # vs. the all-f32 reference.
    assert jnp.allclose(out_small, ref, atol=5e-2, rtol=5e-2)
    assert jnp.allclose(out_big, ref, atol=5e-2, rtol=5e-2)

    print("KERNEL_OK")
</pallas_src>

<mosaic_0001>
module attributes {stable_mosaic.version = 11 : i64} {
  func.func @_mlp_ws_kernel(%arg0: i32, %arg1: memref<16x32xf32, #tpu.memory_space<vmem>>, %arg2: memref<32x64xbf16, #tpu.memory_space<vmem>>, %arg3: memref<1x64xf32, #tpu.memory_space<vmem>>, %arg4: memref<32x32xbf16, #tpu.memory_space<vmem>>, %arg5: memref<1x32xf32, #tpu.memory_space<vmem>>, %arg6: memref<32x8xbf16, #tpu.memory_space<vmem>>, %arg7: memref<1x8xf32, #tpu.memory_space<vmem>>, %arg8: memref<16x8xf32, #tpu.memory_space<vmem>>) attributes {dimension_semantics = [#tpu.dimension_semantics<parallel>], iteration_bounds = array<i64: 3>, scalar_prefetch = 0 : i64, scratch_operands = 0 : i64, tpu.core_type = #tpu.core_type<tc>, window_params = [{transform_indices = @transform_0, window_bounds = array<i64: 16, 32>}, {pipeline_mode = #tpu.pipeline_mode<synchronous>, transform_indices = @transform_1, window_bounds = array<i64: 32, 64>}, {pipeline_mode = #tpu.pipeline_mode<synchronous>, transform_indices = @transform_2, window_bounds = array<i64: 1, 64>}, {pipeline_mode = #tpu.pipeline_mode<synchronous>, transform_indices = @transform_3, window_bounds = array<i64: 32, 32>}, {pipeline_mode = #tpu.pipeline_mode<synchronous>, transform_indices = @transform_4, window_bounds = array<i64: 1, 32>}, {pipeline_mode = #tpu.pipeline_mode<synchronous>, transform_indices = @transform_5, window_bounds = array<i64: 32, 8>}, {pipeline_mode = #tpu.pipeline_mode<synchronous>, transform_indices = @transform_6, window_bounds = array<i64: 1, 8>}, {transform_indices = @transform_7, window_bounds = array<i64: 16, 8>}]} {
    %c0 = arith.constant 0 : index
    %c0_0 = arith.constant 0 : index
    %0 = vector.load %arg1[%c0, %c0_0] : memref<16x32xf32, #tpu.memory_space<vmem>>, vector<16x32xf32>
    %1 = arith.truncf %0 : vector<16x32xf32> to vector<16x32xbf16>
    %c0_1 = arith.constant 0 : index
    %c0_2 = arith.constant 0 : index
    %2 = vector.load %arg2[%c0_1, %c0_2] : memref<32x64xbf16, #tpu.memory_space<vmem>>, vector<32x64xbf16>
    %cst = arith.constant dense<0.000000e+00> : vector<16x64xf32>
    %3 = tpu.matmul %1, %2, %cst {dimension_numbers = #tpu.dot_dimension_numbers<[1], [0], [0], [1], [0, 0, 1, 1], [], []>} : vector<16x32xbf16>, vector<32x64xbf16>, vector<16x64xf32> -> vector<16x64xf32>
    %c0_3 = arith.constant 0 : index
    %c0_4 = arith.constant 0 : index
    %4 = vector.load %arg3[%c0_3, %c0_4] : memref<1x64xf32, #tpu.memory_space<vmem>>, vector<1x64xf32>
    %5 = vector.broadcast %4 : vector<1x64xf32> to vector<16x64xf32>
    %6 = arith.addf %3, %5 : vector<16x64xf32>
    %cst_5 = arith.constant 0.000000e+00 : f32
    %7 = vector.broadcast %cst_5 : f32 to vector<16x64xf32>
    %8 = arith.maximumf %6, %7 : vector<16x64xf32>
    %9 = vector.extract_strided_slice %8 {offsets = [0, 0], sizes = [16, 32], strides = [1, 1]} : vector<16x64xf32> to vector<16x32xf32>
    %10 = vector.extract_strided_slice %8 {offsets = [0, 32], sizes = [16, 32], strides = [1, 1]} : vector<16x64xf32> to vector<16x32xf32>
    %11 = arith.addf %9, %10 : vector<16x32xf32>
    %12 = arith.truncf %11 : vector<16x32xf32> to vector<16x32xbf16>
    %c0_6 = arith.constant 0 : index
    %c0_7 = arith.constant 0 : index
    %13 = vector.load %arg4[%c0_6, %c0_7] : memref<32x32xbf16, #tpu.memory_space<vmem>>, vector<32x32xbf16>
    %cst_8 = arith.constant dense<0.000000e+00> : vector<16x32xf32>
    %14 = tpu.matmul %12, %13, %cst_8 {dimension_numbers = #tpu.dot_dimension_numbers<[1], [0], [0], [1], [0, 0, 1, 1], [], []>} : vector<16x32xbf16>, vector<32x32xbf16>, vector<16x32xf32> -> vector<16x32xf32>
    %c0_9 = arith.constant 0 : index
    %c0_10 = arith.constant 0 : index
    %15 = vector.load %arg5[%c0_9, %c0_10] : memref<1x32xf32, #tpu.memory_space<vmem>>, vector<1x32xf32>
    %16 = vector.broadcast %15 : vector<1x32xf32> to vector<16x32xf32>
    %17 = arith.addf %14, %16 : vector<16x32xf32>
    %cst_11 = arith.constant 0.000000e+00 : f32
    %18 = vector.broadcast %cst_11 : f32 to vector<16x32xf32>
    %19 = arith.maximumf %17, %18 : vector<16x32xf32>
    %20 = arith.truncf %19 : vector<16x32xf32> to vector<16x32xbf16>
    %c0_12 = arith.constant 0 : index
    %c0_13 = arith.constant 0 : index
    %21 = vector.load %arg6[%c0_12, %c0_13] : memref<32x8xbf16, #tpu.memory_space<vmem>>, vector<32x8xbf16>
    %cst_14 = arith.constant dense<0.000000e+00> : vector<16x8xf32>
    %22 = tpu.matmul %20, %21, %cst_14 {dimension_numbers = #tpu.dot_dimension_numbers<[1], [0], [0], [1], [0, 0, 1, 1], [], []>} : vector<16x32xbf16>, vector<32x8xbf16>, vector<16x8xf32> -> vector<16x8xf32>
    %c0_15 = arith.constant 0 : index
    %c0_16 = arith.constant 0 : index
    %23 = vector.load %arg7[%c0_15, %c0_16] : memref<1x8xf32, #tpu.memory_space<vmem>>, vector<1x8xf32>
    %24 = vector.broadcast %23 : vector<1x8xf32> to vector<16x8xf32>
    %25 = arith.addf %22, %24 : vector<16x8xf32>
    %c0_17 = arith.constant 0 : index
    %c0_18 = arith.constant 0 : index
    %26 = vector.load %arg8[%c0_17, %c0_18] : memref<16x8xf32, #tpu.memory_space<vmem>>, vector<16x8xf32>
    tpu.vector_store %arg8[%c0_17, %c0_18], %25 {strides = array<i32>} : memref<16x8xf32, #tpu.memory_space<vmem>>, vector<16x8xf32>,
    return
  }
  func.func @transform_0(%arg0: i32) -> (i32, i32) {
    %c0_i32 = arith.constant 0 : i32
    %c0_i32_0 = arith.constant 0 : i32
    return %arg0, %c0_i32 : i32, i32
  }
  func.func @transform_1(%arg0: i32) -> (i32, i32) {
    %c0_i32 = arith.constant 0 : i32
    %c0_i32_0 = arith.constant 0 : i32
    %c0_i32_1 = arith.constant 0 : i32
    return %c0_i32, %c0_i32_0 : i32, i32
  }
  func.func @transform_2(%arg0: i32) -> (i32, i32) {
    %c0_i32 = arith.constant 0 : i32
    %c0_i32_0 = arith.constant 0 : i32
    %c0_i32_1 = arith.constant 0 : i32
    return %c0_i32, %c0_i32_0 : i32, i32
  }
  func.func @transform_3(%arg0: i32) -> (i32, i32) {
    %c0_i32 = arith.constant 0 : i32
    %c0_i32_0 = arith.constant 0 : i32
    %c0_i32_1 = arith.constant 0 : i32
    return %c0_i32, %c0_i32_0 : i32, i32
  }
  func.func @transform_4(%arg0: i32) -> (i32, i32) {
    %c0_i32 = arith.constant 0 : i32
    %c0_i32_0 = arith.constant 0 : i32
    %c0_i32_1 = arith.constant 0 : i32
    return %c0_i32, %c0_i32_0 : i32, i32
  }
  func.func @transform_5(%arg0: i32) -> (i32, i32) {
    %c0_i32 = arith.constant 0 : i32
    %c0_i32_0 = arith.constant 0 : i32
    %c0_i32_1 = arith.constant 0 : i32
    return %c0_i32, %c0_i32_0 : i32, i32
  }
  func.func @transform_6(%arg0: i32) -> (i32, i32) {
    %c0_i32 = arith.constant 0 : i32
    %c0_i32_0 = arith.constant 0 : i32
    %c0_i32_1 = arith.constant 0 : i32
    return %c0_i32, %c0_i32_0 : i32, i32
  }
  func.func @transform_7(%arg0: i32) -> (i32, i32) {
    %c0_i32 = arith.constant 0 : i32
    %c0_i32_0 = arith.constant 0 : i32
    return %arg0, %c0_i32 : i32, i32
  }
}

</mosaic_0001>

<bundles_post_ra>
// kernel: tpu_custom_call.1
= control target key start
LH: loop header
LB: loop body
LE: loop exit
PB: predicated region body
PF: predicated region fallthrough
CT: control target
= control target key end

     0   :  { %s687_s24 = smov 0   ;;  %s744_s0 = inlined_call_operand.vmem [shape: f32[42,32], index: 0, kind: input, shape index: {}]   ;;  %s745_s1 = inlined_call_operand.vmem [shape: bf16[32,64], index: 1, kind: input, shape index: {}]   ;;  %s746_s2 = inlined_call_operand.vmem [shape: f32[1,64], index: 2, kind: input, shape index: {}]   ;;  %s747_s3 = inlined_call_operand.vmem [shape: bf16[32,32], index: 3, kind: input, shape index: {}]   ;;  %s748_s4 = inlined_call_operand.vmem [shape: f32[1,32], index: 4, kind: input, shape index: {}]   ;;  %s749_s5 = inlined_call_operand.vmem [shape: bf16[32,8], index: 5, kind: input, shape index: {}]   ;;  %s750_s6 = inlined_call_operand.vmem [shape: f32[1,8], index: 6, kind: input, shape index: {}]   ;;  %s751_s7 = inlined_call_operand.vmem [shape: f32[42,8], index: 7, kind: output, shape index: {}]  }
   0x1 LB: > { %s563_s25 = sadd.s32 4294967295, %s642_s24   ;;  %p567_p0 = scmp.ge.s32.totalorder %s642_s24, 1  ;;  %s642_s24 = sphi %s687_s24, %s17_s24  }
   0x2   : > { %p238_p1 = scmp.lt.s32.totalorder %s642_s24, 4 }
   0x4   : > { %p239_p2 = pnand %p567_p0, %p238_p1 }
   0x5   : > { %v630_v0 = vld [vmem:[%s745_s1] sm:$0xff] (!%p239_p2)   ;;  %v644_v1 = vmov (!%p239_p2), 0.0   ;;  %v631_v2 = vld [vmem:[%s745_s1 + $0x8] sm:$0xff] (!%p239_p2)   ;;  %vm645_vm0 = vmmov (!%p239_p2), 0   ;;  %s568_s30 = sshll.u32 (!%p239_p2), %s563_s25, 1  ;;  %vm309_vm1 = vcmask (!%p239_p2), 261120  }
   0x6   : > { %242 = sbr.rel (%p239_p2) target bundleno = 795 (0x31b), region = 48  ;;  %595 = vmatprep.subr.bf16.mxu0 (!%p239_p2), %v644_v1  ;;  %603 = vmatprep.subr.bf16.mxu1 (!%p239_p2), %v644_v1  ;;  %p271_p3 = scmp.lt.s32.totalorder (!%p239_p2), %s568_s30, 5  ;;  %v632_v6 = vld [vmem:[%s747_s3] sm:$0xff] (!%p239_p2)   ;;  %v633_v7 = vld [vmem:[%s747_s3 + $0x8] sm:$0xff] (!%p239_p2)   ;;  %vm504_vm2 = vcmask (!%p239_p2), 64512  }
   0x7   : > { %596 = vmatpush3.bf16.msra.mxu0 (!%p239_p2), %v630_v0  ;;  %599 = vmatprep.mubr.msk.bf16.mxu0 (!%p239_p2), %vm645_vm0, %v644_v1  ;;  %v572_v8 = vld [vmem:[%s746_s2] ss:$0 sm:$0xff] (!%p239_p2)  ;;  %s646_s18 = smov (!%p239_p2), 96   ;;  %v635_v23 = vld [vmem:[%s749_s5 + $0x8] sm:$0xff] (!%p239_p2)  }
   0x8   : > { %597 = vmatprep.subr.bf16.mxu0 (!%p239_p2), %v644_v1  ;;  %607 = vmatprep.mubr.msk.bf16.mxu1 (!%p239_p2), %vm645_vm0, %v644_v1  ;;  %v634_v22 = vld [vmem:[%s749_s5] sm:$0xff] (!%p239_p2)  }
   0x9   : > { %604 = vmatpush3.bf16.msra.mxu1 (!%p239_p2), %v632_v6  ;;  %v576_v24 = vld [vmem:[%s748_s4] ss:$0 sm:$0xff] (!%p239_p2) }
   0xa   : > { %605 = vmatprep.subr.bf16.mxu1 (!%p239_p2), %v644_v1  ;;  %v580_v34 = vld [vmem:[%s750_s6] ss:$0 sm:$0xff] (!%p239_p2) }
   0xb   : > { %598 = vmatpush3.bf16.msra.mxu0 (!%p239_p2), %v631_v2 }
   0xc   : > { %611 = vmatprep.subr.bf16.mxu0 (!%p239_p2), %v644_v1 }
   0xd   : > { %s753_s30 = smov (!%p271_p3, %s568_s30), 5  ;;  %606 = vmatpush3.bf16.msra.mxu1 %v633_v7 }
   0xe   : > { %s569_s8 = sshll.u32 %s753_s30, 3 }
   0xf   : > { %s274_s11 = scalar_lea.vmem %s744_s0, %s569_s8  ;;  %s280_s9 = scalar_lea.vmem %s751_s7, %s569_s8 }
  0x10   : > { %v283_v3 = vld [vmem:[%s274_s11] sm:$0xff]  ;;  %v284_v4 = vld [vmem:[%s274_s11 + $0x8] sm:$0xff] }
  0x11   : > { %v285_v5 = vpack.c.bf16 %v284_v4, %v283_v3 }
  0x13   : > { %600 = vmatmul.mubr.msk.bf16.vlgmr.msra.gmra.mrb[0].mxu0 %vm309_vm1, %v285_v5 }
  0x14   : > { %615 = vmatprep.mubr.msk.bf16.mxu0 %vm645_vm0, %v644_v1  ;;  %612 = vmatpush3.bf16.msra.mxu0 %v634_v22 }
  0x15   : > { %613 = vmatprep.subr.bf16.mxu0 %v644_v1 }
  0x18   : > { %614 = vmatpush3.bf16.msra.mxu0 %v635_v23 }
  0xe6   : > { %v347_v9 = vpop.f32.mrb[0].mxu0 }
  0xe7   : > { %v348_v10 = vadd.f32 %v572_v8, %v347_v9  ;;  %v601_v11 = vpop.f32.mrb[1].mxu0 }
  0xe8   : > { %v350_v12 = vpop.f32.mrb[2].mxu0 }
  0xe9   : > { %v354_v13 = vmax.f32 %v348_v10, 0.0  ;;  %v351_v14 = vadd.f32 %v572_v8, %v350_v12  ;;  %v602_v15 = vpop.f32.mrb[3].mxu0 }
  0xeb   : > { %358 = vrot.lane.b32.xlu0 %v354_v13, %s646_s18  ;;  %v355_v16 = vmax.f32 %v351_v14, 0.0 }
  0xef   : > { %360 = vrot.lane.b32.xlu0 %v355_v16, %s646_s18 }
 0x15d   : > { %v359_v17 = vpop.permute.xlu0 %358 }
 0x15e   : > { %v364_v19 = vadd.f32 %v359_v17, %v354_v13 }
 0x161   : > { %v361_v18 = vpop.permute.xlu0 %360 }
 0x162   : > { %v365_v20 = vadd.f32 %v361_v18, %v355_v16 }
 0x164   : > { %v366_v21 = vpack.c.bf16 %v365_v20, %v364_v19 }
 0x166   : > { %608 = vmatmul.mubr.msk.bf16.vlgmr.msra.gmra.mrb[0].mxu1 %vm309_vm1, %v366_v21 }
 0x239   : > { %v427_v25 = vpop.f32.mrb[0].mxu1 }
 0x23a   : > { %v428_v26 = vadd.f32 %v576_v24, %v427_v25  ;;  %v609_v27 = vpop.f32.mrb[1].mxu1 }
 0x23b   : > { %v430_v28 = vpop.f32.mrb[2].mxu1 }
 0x23c   : > { %v431_v29 = vadd.f32 %v576_v24, %v430_v28  ;;  %v610_v30 = vpop.f32.mrb[3].mxu1  ;;  %v434_v31 = vmax.f32 %v428_v26, 0.0 }
 0x23e   : > { %v435_v32 = vmax.f32 %v431_v29, 0.0 }
 0x240   : > { %v436_v33 = vpack.c.bf16 %v435_v32, %v434_v31 }
 0x242   : > { %616 = vmatmul.mubr.msk.bf16.vlgmr.msra.gmra.mrb[4].mxu0 %vm309_vm1, %v436_v33 }
 0x315   : > { %v497_v35 = vpop.f32.mrb[4].mxu0 }
 0x316   : > { %v498_v36 = vadd.f32 %v580_v34, %v497_v35  ;;  %v617_v37 = vpop.f32.mrb[5].mxu0 }
 0x317   : > { %v500_v38 = vpop.f32.mrb[6].mxu0 }
 0x318   : > { %505 = vst.msk [vmem:[%s280_s9] sm:$0xff] %vm504_vm2, %v498_v36  ;;  %v501_v39 = vadd.f32 %v580_v34, %v500_v38  ;;  %v618_v40 = vpop.f32.mrb[7].mxu0 }
 0x31a   : > { %506 = vst.msk [vmem:[%s280_s9 + $0x8] sm:$0xff] %vm504_vm2, %v501_v39 }
 0x31b PF: > { %s17_s24 = sadd.s32 1, %s642_s24  }
 0x31c   : > { %p14_p4 = scmp.ge.s32.totalorder %s17_s24, 5  }
 0x31e   :  { %16 = sbr.rel (!%p14_p4) target bundleno = 1 (0x1), region = 78 }

</bundles_post_ra>
